<compile_context>
chip_gen: v7x
topology: tpu7x:2x2x1
jax: 0.10.0
libtpu: 0.0.40
codegen_flags: <defaults>
</compile_context>

<pallas_src>
import functools

import jax
import jax.numpy as jnp
from jax.experimental import pallas as pl
from jax.experimental.pallas import tpu as pltpu


# ----------------------------- Pallas kernels ------------------------------

def degree_kernel(adj_ref, d_ref):
    """d = rsqrt(rowsum(A) + 1)  (the +1 is the self loop, folded analytically)."""
    deg = jnp.sum(adj_ref[...].astype(jnp.float32), axis=1, keepdims=True) + 1.0
    d_ref[...] = jax.lax.rsqrt(deg)


def gcn_fused_kernel(adj_ref, x_ref, d_ref, batch_ref, newsx_ref,
                     w_ref, b_ref, w2_ref, b2_ref, wn_ref, bn_ref,
                     w3_ref, b3_ref,
                     out_ref, scaled_ref, pooled_ref,
                     *, num_graphs, tile_m):
    """Fused: GCNConv(relu) -> global_max_pool -> lin2(relu) / linnews(relu)
    -> lin3 -> sigmoid.  Grid iterates over node row tiles (sequential)."""
    i = pl.program_id(0)
    neg = jnp.float32(-1e30)

    # ---- one-time init: scaled features d * (X @ W) and the pooling accumulator ----
    @pl.when(i == 0)
    def _init():
        y = jnp.dot(x_ref[...], w_ref[...], preferred_element_type=jnp.float32)
        scaled_ref[...] = d_ref[...] * y                       # [N, Hp] = D^-1/2 (X W)
        pooled_ref[...] = jnp.full(pooled_ref.shape, neg, jnp.float32)

    # ---- GCNConv on this row tile:  h = relu( D^-1/2 (A+I) D^-1/2 (X W) + b ) ----
    #      = relu( d * (A @ (d*XW) + (d*XW)) + b )   -- no a_norm materialization.
    row0 = pl.multiple_of(i * tile_m, tile_m)
    agg = jnp.dot(adj_ref[...],                               # [tm, N] bf16 row tile
                  scaled_ref[...].astype(jnp.bfloat16),       # [N, Hp] bf16
                  preferred_element_type=jnp.float32)         # [tm, Hp] f32
    d_tile = d_ref[pl.ds(row0, tile_m), :]                    # [tm, 1]
    self_loop = scaled_ref[pl.ds(row0, tile_m), :]            # I @ (d*XW) rows
    h_tile = jnp.maximum(d_tile * (agg + self_loop) + b_ref[...], 0.0)

    # ---- running segment-max pool, vectorized over graphs (no per-g loop) ----
    gid = jax.lax.broadcasted_iota(jnp.int32, (tile_m, num_graphs), 1)
    member = batch_ref[...] == gid                            # [tm, G] (padded nodes: all False)
    masked = jnp.where(member[:, :, None], h_tile[:, None, :], neg)   # [tm, G, Hp]
    pooled_ref[...] = jnp.maximum(pooled_ref[...], jnp.max(masked, axis=0))

    # ---- heads on the final tile ----
    @pl.when(i == pl.num_programs(0) - 1)
    def _heads():
        pooled = pooled_ref[...]                              # [G, Hp]
        # Guard the -1e30 sentinel in case a graph id has no nodes.
        pooled = jnp.where(pooled > jnp.float32(-1e29), pooled, 0.0)
        h2 = jnp.maximum(
            jnp.dot(pooled, w2_ref[...], preferred_element_type=jnp.float32)
            + b2_ref[...], 0.0)
        news = jnp.maximum(
            jnp.dot(newsx_ref[...], wn_ref[...], preferred_element_type=jnp.float32)
            + bn_ref[...], 0.0)
        cat = jnp.concatenate([h2, news], axis=-1)            # [G, 2*Hp]
        logits = jnp.dot(cat, w3_ref[...],
                         preferred_element_type=jnp.float32) + b3_ref[...]
        out_ref[...] = jax.nn.sigmoid(logits)


# ------------------------------ JAX wrapper ---------------------------------

def _round_up(a, b):
    return ((a + b - 1) // b) * b


def _pad2(a, rows, cols):
    return jnp.pad(a, ((0, rows - a.shape[0]), (0, cols - a.shape[1])))


def gcn_forward(params, x, adj, batch, num_graphs, *, tile_m=256, lane=128):
    """Reproduces GCN.forward semantics."""
    n, cin = x.shape

    # Only the last conv layer contributes: the PyTorch loop reads `x` every
    # iteration and overwrites `h`, so earlier conv layers are dead compute.
    w_conv, b_conv = params["convs"][-1]
    hidden = w_conv.shape[1]
    w2, b2 = params["lin2"]
    wn, bn = params["linnews"]
    w3, b3 = params["lin3"]
    out_dim = w3.shape[1]

    hp = _round_up(hidden, lane)              # lane-padded hidden width
    op = _round_up(out_dim, lane)             # lane-padded output width
    tile_m = max(8, (tile_m // 8) * 8)        # sublane-aligned row tile
    n_pad = _round_up(n, tile_m)
    num_tiles = n_pad // tile_m

    # Node padding: zero adj rows/cols (deg 0 -> d = 1, harmless) and an
    # out-of-range batch id so padded nodes never participate in pooling.
    adj_p = jnp.pad(adj, ((0, n_pad - n), (0, n_pad - n))).astype(jnp.bfloat16)
    x_p = jnp.pad(x, ((0, n_pad - n), (0, 0))).astype(jnp.float32)
    batch_p = jnp.pad(batch.astype(jnp.int32), (0, n_pad - n),
                      constant_values=num_graphs).reshape(n_pad, 1)

    # Lane padding of weights/biases with zeros -> padded channels stay exactly 0.
    w_conv_p = _pad2(w_conv, cin, hp)
    b_conv_p = jnp.pad(b_conv, (0, hp - hidden)).reshape(1, hp)
    w2_p = _pad2(w2, hp, hp)
    b2_p = jnp.pad(b2, (0, hp - hidden)).reshape(1, hp)
    wn_p = _pad2(wn, cin, hp)
    bn_p = jnp.pad(bn, (0, hp - hidden)).reshape(1, hp)
    w3_p = jnp.zeros((2 * hp, op), jnp.float32)
    w3_p = w3_p.at[:hidden, :out_dim].set(w3[:hidden])          # rows for h2
    w3_p = w3_p.at[hp:hp + hidden, :out_dim].set(w3[hidden:])   # rows for news
    b3_p = jnp.pad(b3, (0, op - out_dim)).reshape(1, op)

    # Root-node gather (data-dependent indexing kept as JAX glue).
    diff = batch[1:] - batch[:-1]
    nz = jnp.nonzero(diff, size=num_graphs - 1)[0]
    root = jnp.concatenate([jnp.zeros((1,), nz.dtype), nz + 1])  # [G]
    news_x = x[root].astype(jnp.float32)                         # [G, Cin]

    vmem_cap = 32 * 1024 * 1024

    # Kernel 1: per-node inverse-sqrt degrees (needs a full adj pass before the
    # aggregation can column-scale XW).
    d = pl.pallas_call(
        degree_kernel,
        out_shape=jax.ShapeDtypeStruct((n_pad, 1), jnp.float32),
        grid_spec=pltpu.PrefetchScalarGridSpec(
            num_scalar_prefetch=0, grid=(num_tiles,),
            in_specs=[pl.BlockSpec((tile_m, n_pad), lambda i: (i, 0))],
            out_specs=pl.BlockSpec((tile_m, 1), lambda i: (i, 0))),
        compiler_params=pltpu.CompilerParams(
            dimension_semantics=("parallel",), vmem_limit_bytes=vmem_cap),
    )(adj_p)

    # Kernel 2: fused conv + pool + heads, row-tiled over nodes.
    kernel = functools.partial(gcn_fused_kernel,
                               num_graphs=num_graphs, tile_m=tile_m)
    out_p = pl.pallas_call(
        kernel,
        out_shape=jax.ShapeDtypeStruct((num_graphs, op), jnp.float32),
        grid_spec=pltpu.PrefetchScalarGridSpec(
            num_scalar_prefetch=0, grid=(num_tiles,),
            in_specs=[
                pl.BlockSpec((tile_m, n_pad), lambda i: (i, 0)),    # adj row tile (bf16)
                pl.BlockSpec((n_pad, cin), lambda i: (0, 0)),       # x (full, fetched once)
                pl.BlockSpec((n_pad, 1), lambda i: (0, 0)),         # d (full)
                pl.BlockSpec((tile_m, 1), lambda i: (i, 0)),        # batch id tile
                pl.BlockSpec((num_graphs, cin), lambda i: (0, 0)),  # root-node features
                pl.BlockSpec((cin, hp), lambda i: (0, 0)),          # conv W
                pl.BlockSpec((1, hp), lambda i: (0, 0)),            # conv b
                pl.BlockSpec((hp, hp), lambda i: (0, 0)),           # lin2 W
                pl.BlockSpec((1, hp), lambda i: (0, 0)),            # lin2 b
                pl.BlockSpec((cin, hp), lambda i: (0, 0)),          # linnews W
                pl.BlockSpec((1, hp), lambda i: (0, 0)),            # linnews b
                pl.BlockSpec((2 * hp, op), lambda i: (0, 0)),       # lin3 W ([h2|news] rows)
                pl.BlockSpec((1, op), lambda i: (0, 0)),            # lin3 b
            ],
            out_specs=pl.BlockSpec((num_graphs, op), lambda i: (0, 0)),
            scratch_shapes=[
                pltpu.VMEM((n_pad, hp), jnp.float32),       # d * (X @ W), resident
                pltpu.VMEM((num_graphs, hp), jnp.float32),  # running max-pool
            ]),
        compiler_params=pltpu.CompilerParams(
            dimension_semantics=("arbitrary",), vmem_limit_bytes=vmem_cap),
    )(adj_p, x_p, d, batch_p, news_x,
      w_conv_p, b_conv_p, w2_p, b2_p, wn_p, bn_p, w3_p, b3_p)

    return out_p[:, :out_dim]


# ------------------------------ param init ----------------------------------

def init_params(key, input_channels, hidden_channels, output_channels, num_layers):
    def uniform(k, shape, fan_in):
        bound = 1.0 / jnp.sqrt(jnp.float32(fan_in))
        return jax.random.uniform(k, shape, jnp.float32, -bound, bound)

    keys = jax.random.split(key, 2 * num_layers + 6)
    params = {"convs": []}
    ki = 0
    for _ in range(num_layers):
        w = uniform(keys[ki], (input_channels, hidden_channels), input_channels); ki += 1
        b = jnp.zeros((hidden_channels,), jnp.float32); ki += 1       # GCNConv bias zeros
        params["convs"].append((w, b))
    params["linnews"] = (uniform(keys[ki], (input_channels, hidden_channels), input_channels),
                         uniform(keys[ki + 1], (hidden_channels,), input_channels)); ki += 2
    params["lin2"] = (uniform(keys[ki], (hidden_channels, hidden_channels), hidden_channels),
                      uniform(keys[ki + 1], (hidden_channels,), hidden_channels)); ki += 2
    params["lin3"] = (uniform(keys[ki], (2 * hidden_channels, output_channels), 2 * hidden_channels),
                      uniform(keys[ki + 1], (output_channels,), 2 * hidden_channels)); ki += 2
    return params


# --------------------------------- driver ------------------------------------

if __name__ == "__main__":
    INPUT_CHANNELS = 4
    HIDDEN_CHANNELS = 32
    OUTPUT_CHANNELS = 4
    NUM_LAYERS = 2
    N_NODES = 16
    NUM_GRAPHS = 2
    TILE_M = 8          # small row tile so the demo exercises the multi-tile grid path

    key = jax.random.PRNGKey(0)
    k_param, k_x, k_adj = jax.random.split(key, 3)

    params = init_params(k_param, INPUT_CHANNELS, HIDDEN_CHANNELS,
                         OUTPUT_CHANNELS, NUM_LAYERS)

    x = jax.random.normal(k_x, (N_NODES, INPUT_CHANNELS), jnp.float32)

    # Block-diagonal symmetric adjacency (two graphs: nodes 0-8 and 9-15).
    batch = jnp.array([0] * 9 + [1] * 7, dtype=jnp.int32)
    raw = jax.random.bernoulli(k_adj, 0.3, (N_NODES, N_NODES)).astype(jnp.float32)
    same_graph = (batch[:, None] == batch[None, :]).astype(jnp.float32)
    adj = jnp.maximum(raw, raw.T) * same_graph
    adj = adj * (1.0 - jnp.eye(N_NODES, dtype=jnp.float32))  # no explicit self loops

    out = gcn_forward(params, x, adj, batch, NUM_GRAPHS, tile_m=TILE_M)
    out = jax.block_until_ready(out)

    assert out.shape == (NUM_GRAPHS, OUTPUT_CHANNELS)
    assert bool(jnp.all(jnp.isfinite(out)))
    assert bool(jnp.all((out >= 0.0) & (out <= 1.0)))
    print("KERNEL_OK")
</pallas_src>

<mosaic_0001>
module attributes {stable_mosaic.version = 11 : i64} {
  func.func @degree_kernel(%arg0: i32, %arg1: memref<8x16xbf16, #tpu.memory_space<vmem>>, %arg2: memref<8x1xf32, #tpu.memory_space<vmem>>) attributes {dimension_semantics = [#tpu.dimension_semantics<parallel>], iteration_bounds = array<i64: 2>, scalar_prefetch = 0 : i64, scratch_operands = 0 : i64, tpu.core_type = #tpu.core_type<tc>, window_params = [{transform_indices = @transform_0, window_bounds = array<i64: 8, 16>}, {transform_indices = @transform_1, window_bounds = array<i64: 8, 1>}]} {
    %c0 = arith.constant 0 : index
    %c0_0 = arith.constant 0 : index
    %0 = vector.load %arg1[%c0, %c0_0] : memref<8x16xbf16, #tpu.memory_space<vmem>>, vector<8x16xbf16>
    %1 = arith.extf %0 : vector<8x16xbf16> to vector<8x16xf32>
    %cst = arith.constant dense<0.000000e+00> : vector<8xf32>
    %2 = vector.multi_reduction <add>, %1, %cst [1] : vector<8x16xf32> to vector<8xf32>
    %3 = vector.shape_cast %2 : vector<8xf32> to vector<8x1xf32>
    %cst_1 = arith.constant 1.000000e+00 : f32
    %4 = vector.broadcast %cst_1 : f32 to vector<8x1xf32>
    %5 = arith.addf %3, %4 : vector<8x1xf32>
    %6 = math.rsqrt %5 : vector<8x1xf32>
    %c0_2 = arith.constant 0 : index
    %c0_3 = arith.constant 0 : index
    %7 = vector.load %arg2[%c0_2, %c0_3] : memref<8x1xf32, #tpu.memory_space<vmem>>, vector<8x1xf32>
    tpu.vector_store %arg2[%c0_2, %c0_3], %6 {strides = array<i32>} : memref<8x1xf32, #tpu.memory_space<vmem>>, vector<8x1xf32>,
    return
  }
  func.func @transform_0(%arg0: i32) -> (i32, i32) {
    %c0_i32 = arith.constant 0 : i32
    %c0_i32_0 = arith.constant 0 : i32
    return %arg0, %c0_i32 : i32, i32
  }
  func.func @transform_1(%arg0: i32) -> (i32, i32) {
    %c0_i32 = arith.constant 0 : i32
    %c0_i32_0 = arith.constant 0 : i32
    return %arg0, %c0_i32 : i32, i32
  }
}

</mosaic_0001>

<bundles_post_ra>
// kernel: tpu_custom_call.1
= control target key start
LH: loop header
LB: loop body
LE: loop exit
PB: predicated region body
PF: predicated region fallthrough
CT: control target
= control target key end

     0   :  { %6 = vsyncpa [#allocation3], 0  ;;  %s442_s0 = inlined_call_operand.hbm [shape: bf16[16,16], index: 0, kind: input, shape index: {}]   ;;  %s443_s1 = inlined_call_operand.vmem [shape: f32[16,1], index: 1, kind: output, shape index: {}]  }
   0x1   :  { %8 = vsyncpa [#allocation3 + $0x1], 0  ;;  %s335_s6 = smov 0   ;;  %s337_s7 = smov 0  }
   0x2   :  { %s339_s8 = smov 0   ;;  %s341_s9 = smov 0  }
   0x3 LB: > { %s354_s10 = sadd.s32 4294967295, %s322_s9   ;;  %s357_s11 = sadd.s32 1, %s322_s9   ;;  %s322_s9 = sphi %s341_s9, %s451_s9   ;;  %s318_s8 = sphi %s339_s8, %s450_s8   ;;  %s314_s7 = sphi %s337_s7, %s449_s7   ;;  %s310_s6 = sphi %s335_s6, %s448_s6  }
   0x4   : > { %s18_s12 = ssub.s32 %s322_s9, %s357_s11  ;;  %s21_s13 = sadd.s32 1, %s318_s8 }
   0x5   : > { %p19_p0 = scmp.eq.s32.totalorder %s18_s12, 0  ;;  %p28_p1 = scmp.ne.s32.totalorder %s318_s8, %s314_s7 }
   0x6   : > { %p29_p2 = scmp.eq.s32.totalorder %s322_s9, 0  ;;  %p34_p3 = scmp.ne.s32.totalorder %s314_s7, %s310_s6 }
   0x7   : > { %s367_s14 = scalar_select %p19_p0, %s318_s8, %s21_s13  }
   0x8   : > { %p30_p4 = por %p29_p2, %p28_p1  ;;  %p35_p5 = scmp.eq.s32.totalorder %s354_s10, 0 }
   0x9   : > { %p223_p6 = scmp.lt.s32.totalorder %s322_s9, 2  ;;  %s84_s16 = sand.u32 1, %s318_s8  }
   0xa   : > { %p371_p7 = por %p35_p5, %p34_p3  ;;  %s210_s17 = sshll.u32 %s84_s16, 2 }
   0xb   : > { %s211_s18 = sshll.u32 %s322_s9, 6  ;;  %s88_s22 = scalar_lea.vmem [#allocation2], %s210_s17 }
   0xc   : > { %s380_s21 = scalar_lea.hbm %s442_s0, %s211_s18  ;;  %s95_s23 = sshll.u32 %s88_s22, 4  ;;  %s382_s23 = int_to_ptr.vmem [resolvable:$true] %s95_s23 }
   0xd   : > { %p384_p8 = pnand %p223_p6, %p30_p4  ;;  %s85_s25 = scalar_lea.sflag [#allocation3], %s84_s16 }
   0xe   : > { %s258_s26 = scalar_lea.hbm %s380_s21, 64  ;;  %s263_s29 = scalar_lea.hbm %s442_s0, 128 }
   0xf   : > { %p259_p11 = scmp.ne.s32.totalorder %s380_s21, %s258_s26  ;;  %p260_p12 = pneg %p384_p8 }
  0x10   : > { %p264_p1 = scmp.lt.u32.totalorder %s380_s21, %s442_s0  ;;  %p265_p2 = scmp.lt.u32.totalorder %s263_s29, %s258_s26 }
  0x11   : > { %p261_p13 = pnand %p260_p12, %p259_p11  ;;  %p267_p4 = scmp.lt.u32.totalorder %s258_s26, %s380_s21 }
  0x12   : > { %p266_p3 = por %p265_p2, %p264_p1 }
  0x13   : > { %p262_p0 = pneg %p261_p13 }
  0x14   : > { %p268_p5 = por %p267_p4, %p266_p3 }
  0x16   : > { %p269_p6 = pnand %p268_p5, %p262_p0 }
  0x18   : > { %272 = shalt.err (!%p269_p6)
}
  0x19   : > { %s273_s3 = scalar_lea.vmem %s382_s23, 64  ;;  %s324_s4 = smov [#allocation2]  }
  0x1a   : > { %p274_p11 = scmp.ne.s32.totalorder %s382_s23, %s273_s3  ;;  %s278_s5 = sshll.u32 %s324_s4, 4  ;;  %s279_s5 = int_to_ptr.vmem [resolvable:$false] %s278_s5 }
  0x1b   : > { %s280_s6 = scalar_lea.vmem %s279_s5, 128  ;;  %p281_p10 = scmp.lt.s32.totalorder %s382_s23, %s279_s5 }
  0x1c   : > { %p276_p13 = pnand %p274_p11, %p260_p12  ;;  %p282_p1 = scmp.lt.s32.totalorder %s280_s6, %s273_s3 }
  0x1e   : > { %p277_p9 = pneg %p276_p13  ;;  %p283_p2 = por %p282_p1, %p281_p10 }
  0x20   : > { %p284_p3 = pnand %p283_p2, %p277_p9 }
  0x22   : > { %287 = shalt.err (!%p284_p3)
}
  0x23   : > { %222 = dma.hbm_to_vmem [thread:$0]  (!%p384_p8), %s380_s21, 64, %s382_s23, %s85_s25  }
  0x24   : > { %p446_p0 = scmp.lt.s32.totalorder %s322_s9, 3  ;;  %p447_p4 = scmp.ge.s32.totalorder %s322_s9, 1 }
  0x26   : > { %p101_p12 = pnand %p447_p4, %p446_p0 }
  0x27   : > { %s106_s12 = sand.u32 (!%p101_p12), 1, %s314_s7  }
  0x28   : > { %104 = sbr.rel (%p101_p12) target bundleno = 208 (0xd0), region = 24  ;;  %s213_s13 = sshll.u32 (!%p101_p12), %s106_s12, 2 }
  0x29   : > { %s107_s16 = scalar_lea.sflag (!%p101_p12), [#allocation3], %s106_s12  ;;  %s110_s17 = scalar_lea.vmem (!%p101_p12), [#allocation2], %s213_s13 }
  0x2f   : > { %305 = dma.done.wait (%p371_p7), %s107_s16, 64  }
  0x30   : > { %307 = vsyncadd (%p371_p7), %s107_s16, 4294967232  ;;  %v132_v0 = vld [vmem:[%s110_s17] sm:$0xf]  ;;  %vm134_vm0 = vcmask 130048   ;;  %p128_p8 = scmp.lt.s32.totalorder %s354_s10, 1  ;;  %vm140_vm1 = vcmask 7168  }
  0x31   : > { %v133_v1 = vunpack.c.l.bf16 %v132_v0 }
  0x32   : > { %s453_s10 = smov (!%p128_p8, %s354_s10), 1 }
  0x33   : > { %v135_v2 = vsel %vm134_vm0, %v133_v1, 0.0  ;;  %s214_s9 = sshll.u32 %s453_s10, 3 }
  0x34   : > { %136 = vadd.xlane.f32.xlu0 %v135_v2  ;;  %s131_s20 = scalar_lea.vmem %s443_s1, %s214_s9 }
  0xc1   : > { %v137_v3 = vpop.xlane.xlu0 %136 }
  0xc2   : > { %v138_v4 = vadd.f32 1.0, %v137_v3 }
  0xc4   : > { %256 = vrsqrt.f32 %v138_v4 }
  0xce   : > { %v257_v5 = vpop.eup %256 }
  0xcf   : > { %141 = vst.msk [vmem:[%s131_s20] sm:$0xff] %vm140_vm1, %v257_v5 }
  0xd0 PF: > { %p11_p7 = scmp.ge.s32.totalorder %s357_s11, 4   ;;  %s448_s6 = smov %s314_s7 }
  0xd1   : > { %s449_s7 = smov %s318_s8  ;;  %s450_s8 = smov %s367_s14 }
  0xd2   : > { %s451_s9 = smov %s357_s11  ;;  %13 = sbr.rel (!%p11_p7) target bundleno = 3 (0x3), region = 64 }
  0xd9   :  { %161 = vsyncpa [#allocation3], 1 }
  0xda   :  { %163 = vsyncpa [#allocation3 + $0x1], 1 }

</bundles_post_ra>
